<compile_context>
chip_gen: v5e
topology: v5e:2x2
jax: 0.10.0
libtpu: 0.0.40
codegen_flags: <defaults>
</compile_context>

<pallas_src>
import jax
import jax.numpy as jnp
from jax.experimental import pallas as pl
from jax.experimental.pallas import tpu as pltpu


def _sigmoid_kernel(x_ref, o_ref):
    x = x_ref[...]
    # Widen in-kernel only (v5e has no bf16 VPU/EUP); HBM traffic stays narrow.
    xf = x.astype(jnp.float32)
    y = 0.5 * (jnp.tanh(0.5 * xf) + 1.0)  # == sigmoid(x), one EUP op
    o_ref[...] = y.astype(o_ref.dtype)


def testnet_forward(x):
    """Forward pass of TestNet (Sigmoid) as a tiled, pipelined Pallas TPU kernel.

    x: any-shape float array (PyTorch module is purely elementwise).
    """
    orig_shape = x.shape
    dtype = x.dtype
    n = x.size

    # Lane-dense slab: cols multiple of 128, rows multiple of 8.
    COLS = 512
    rows = -(-n // COLS)                 # ceil(n / COLS)
    rows = ((rows + 7) // 8) * 8         # round rows up to a multiple of 8
    TR = min(256, rows)                  # tile rows (multiple of 8); ~512 KiB f32/tile
    rows = -(-rows // TR) * TR           # make rows an exact multiple of TR
    n_pad = rows * COLS

    flat = x.reshape(-1)
    if n_pad != n:
        # Pad with zeros; padded region's outputs are never read back.
        flat = jnp.pad(flat, (0, n_pad - n))
    x2d = flat.reshape(rows, COLS)

    out = pl.pallas_call(
        _sigmoid_kernel,
        out_shape=jax.ShapeDtypeStruct((rows, COLS), dtype),
        grid=(rows // TR,),
        in_specs=[pl.BlockSpec((TR, COLS), lambda i: (i, 0))],
        out_specs=pl.BlockSpec((TR, COLS), lambda i: (i, 0)),
        compiler_params=pltpu.CompilerParams(
            dimension_semantics=("parallel",)),  # lets v7x use both TensorCores
    )(x2d)

    return out.reshape(-1)[:n].reshape(orig_shape)


if __name__ == "__main__":
    key = jax.random.PRNGKey(0)
    # Mirrors `torch.reshape(input, (-1, 1, 2, 2))`: batch=2, C=1, H=W=2.
    x = jax.random.normal(key, (2, 1, 2, 2), dtype=jnp.float32)

    y = testnet_forward(x)
    jax.block_until_ready(y)

    # Sanity check against pure-JAX reference (tanh-form sigmoid on EUP -> loosen tol slightly).
    ref = jax.nn.sigmoid(x)
    assert jnp.allclose(y, ref, atol=1e-5, rtol=1e-5), "mismatch vs reference sigmoid"

    print("KERNEL_OK")
</pallas_src>

<mosaic_0001>
module attributes {stable_mosaic.version = 11 : i64} {
  func.func @_sigmoid_kernel(%arg0: i32, %arg1: memref<8x512xf32, #tpu.memory_space<vmem>>, %arg2: memref<8x512xf32, #tpu.memory_space<vmem>>) attributes {dimension_semantics = [#tpu.dimension_semantics<parallel>], iteration_bounds = array<i64: 1>, scalar_prefetch = 0 : i64, scratch_operands = 0 : i64, tpu.core_type = #tpu.core_type<tc>, window_params = [{transform_indices = @transform_0, window_bounds = array<i64: 8, 512>}, {transform_indices = @transform_1, window_bounds = array<i64: 8, 512>}]} {
    %c0 = arith.constant 0 : index
    %c0_0 = arith.constant 0 : index
    %0 = vector.load %arg1[%c0, %c0_0] : memref<8x512xf32, #tpu.memory_space<vmem>>, vector<8x512xf32>
    %cst = arith.constant 5.000000e-01 : f32
    %1 = vector.broadcast %cst : f32 to vector<8x512xf32>
    %2 = arith.mulf %1, %0 : vector<8x512xf32>
    %3 = math.tanh %2 : vector<8x512xf32>
    %cst_1 = arith.constant 1.000000e+00 : f32
    %4 = vector.broadcast %cst_1 : f32 to vector<8x512xf32>
    %5 = arith.addf %3, %4 : vector<8x512xf32>
    %cst_2 = arith.constant 5.000000e-01 : f32
    %6 = vector.broadcast %cst_2 : f32 to vector<8x512xf32>
    %7 = arith.mulf %6, %5 : vector<8x512xf32>
    %c0_3 = arith.constant 0 : index
    %c0_4 = arith.constant 0 : index
    %8 = vector.load %arg2[%c0_3, %c0_4] : memref<8x512xf32, #tpu.memory_space<vmem>>, vector<8x512xf32>
    tpu.vector_store %arg2[%c0_3, %c0_4], %7 {strides = array<i32>} : memref<8x512xf32, #tpu.memory_space<vmem>>, vector<8x512xf32>,
    return
  }
  func.func @transform_0(%arg0: i32) -> (i32, i32) {
    %c0_i32 = arith.constant 0 : i32
    %c0_i32_0 = arith.constant 0 : i32
    return %arg0, %c0_i32 : i32, i32
  }
  func.func @transform_1(%arg0: i32) -> (i32, i32) {
    %c0_i32 = arith.constant 0 : i32
    %c0_i32_0 = arith.constant 0 : i32
    return %arg0, %c0_i32 : i32, i32
  }
}

</mosaic_0001>

<bundles_post_ra>
// kernel: tpu_custom_call.1
= control target key start
LH: loop header
LB: loop body
LE: loop exit
PB: predicated region body
PF: predicated region fallthrough
CT: control target
= control target key end

     0   :  { %6 = vsyncpa [#allocation3], 0  ;;  %s144_s0 = inlined_call_operand.hbm [shape: f32[8,512], index: 0, kind: input, shape index: {}]   ;;  %s145_s1 = inlined_call_operand.hbm [shape: f32[8,512], index: 1, kind: output, shape index: {}]  }
   0x1   :  { %7 = vsyncpa [#allocation4], 0  ;;  %s13_s8 = sshll.u32 %s144_s0, 4  ;;  %s126_s9 = smov [#allocation2]   ;;  %s14_s8 = int_to_ptr.hbm [resolvable:$true] %s13_s8 }
   0x2   :  { %s15_s10 = sshll.u32 %s126_s9, 4  ;;  %s16_s10 = int_to_ptr.vmem [resolvable:$true] %s15_s10 }
   0x3   :  { %18 = dma.hbm_to_vmem [thread:$0]  %s14_s8, 512, %s16_s10, [#allocation3]  }
   0x4   :  { %122 = dma.done.wait [#allocation3], 512  }
   0x5   :  { %123 = vsyncadd [#allocation3], 4294966784  ;;  %v23_v0 = vld [vmem:[#allocation2] sm:$0xff]  ;;  %v24_v1 = vld [vmem:[#allocation2 + $0x8] sm:$0xff]  ;;  %s127_s0 = smov [#allocation5]   ;;  %s54_s14 = sshll.u32 %s145_s1, 4  ;;  %s55_s14 = int_to_ptr.hbm [resolvable:$true] %s54_s14 }
   0x6   :  { %v25_v2 = vld [vmem:[#allocation2 + $0x10] sm:$0xff]  ;;  %v27_v3 = vmul.f32 0.5, %v23_v0  ;;  %v28_v4 = vmul.f32 0.5, %v24_v1  ;;  %v26_v6 = vld [vmem:[#allocation2 + $0x18] sm:$0xff]  ;;  %s52_s11 = sshll.u32 %s127_s0, 4  ;;  %s53_s11 = int_to_ptr.vmem [resolvable:$true] %s52_s11 }
   0x7   :  { %v29_v5 = vmul.f32 0.5, %v25_v2  ;;  %v30_v7 = vmul.f32 0.5, %v26_v6 }
   0x8   :  { %66 = vtanh.f32 %v27_v3 }
   0x9   :  { %68 = vtanh.f32 %v28_v4 }
   0xa   :  { %70 = vtanh.f32 %v29_v5 }
   0xb   :  { %72 = vtanh.f32 %v30_v7 }
   0xe   :  { %v67_v8 = vpop.eup %66 }
   0xf   :  { %v69_v9 = vpop.eup %68  ;;  %v35_v10 = vadd.f32 1.0, %v67_v8 }
  0x10   :  { %v71_v11 = vpop.eup %70  ;;  %v36_v12 = vadd.f32 1.0, %v69_v9 }
  0x11   :  { %v73_v13 = vpop.eup %72  ;;  %v39_v14 = vmul.f32 0.5, %v35_v10  ;;  %v37_v15 = vadd.f32 1.0, %v71_v11 }
  0x12   :  { %v40_v16 = vmul.f32 0.5, %v36_v12  ;;  %v38_v17 = vadd.f32 1.0, %v73_v13 }
  0x13   :  { %43 = vst [vmem:[#allocation5] sm:$0xff] %v39_v14  ;;  %v41_v18 = vmul.f32 0.5, %v37_v15 }
  0x14   :  { %44 = vst [vmem:[#allocation5 + $0x8] sm:$0xff] %v40_v16  ;;  %v42_v19 = vmul.f32 0.5, %v38_v17 }
  0x15   :  { %45 = vst [vmem:[#allocation5 + $0x10] sm:$0xff] %v41_v18 }
  0x16   :  { %46 = vst [vmem:[#allocation5 + $0x18] sm:$0xff] %v42_v19 }
  0x17   :  { %57 = dma.vmem_to_hbm [thread:$0]  %s53_s11, 512, %s55_s14, [#allocation4]  }
  0x18   :  { %124 = dma.done.wait [#allocation4], 512  }
  0x19   :  { %125 = vsyncadd [#allocation4], 4294966784 }
  0x1a   :  { %62 = vsyncpa [#allocation3], 1 }
  0x1b   :  { %63 = vsyncpa [#allocation4], 1 }

</bundles_post_ra>
